<compile_context>
chip_gen: v7x
topology: tpu7x:2x2x1
jax: 0.10.0
libtpu: 0.0.40
codegen_flags: <defaults>
</compile_context>

<pallas_src>
import functools

import jax
import jax.numpy as jnp
from jax import lax
from jax.experimental import pallas as pl
from jax.experimental.pallas import tpu as pltpu


# ----------------------------- roll convention probe -------------------------

def _probe_roll_is_jnp():
    """Resolve pltpu.roll's shift direction once, on the real backend, at import time
    (jnp.roll convention: out[i] = in[i - shift])."""
    def probe(x_ref, o_ref):
        o_ref[...] = pltpu.roll(x_ref[...], shift=1, axis=1)

    x = jnp.arange(128, dtype=jnp.float32).reshape(1, 128)
    y = pl.pallas_call(
        probe, out_shape=jax.ShapeDtypeStruct((1, 128), jnp.float32))(x)
    return bool(y[0, 0] == 127.0)


_ROLL_IS_JNP = _probe_roll_is_jnp()     # module constant, never evaluated inside a trace


# ----------------------------- small helpers --------------------------------

def _pdf_mean_map(H, W, loc, scal, ps):
    """mean_l of MVN(loc_l, scale_tril=diag(scal_l)).pdf((i, j) * position_scal), (H, W).

    Batch- and channel-independent, so it is computed once outside the kernel."""
    ii = jnp.arange(H, dtype=jnp.float32)[:, None, None] * ps   # coordinate 0 (NCHW dim 2)
    jj = jnp.arange(W, dtype=jnp.float32)[None, :, None] * ps   # coordinate 1 (NCHW dim 3)
    z0 = (ii - loc[:, 0]) / scal[:, 0]
    z1 = (jj - loc[:, 1]) / scal[:, 1]
    logp = (-0.5 * (z0 ** 2 + z1 ** 2)
            - jnp.log(scal[:, 0]) - jnp.log(scal[:, 1]) - jnp.log(2.0 * jnp.pi))
    return jnp.mean(jnp.exp(logp), axis=-1)                     # (H, W)


def _build_cols(p, C, ipb):
    """Pack every parameter into one lane-dense (R, 18*R + 54) f32 matrix.

    Column layout (R = ipb*C packed rows, sublane oriented so each column broadcasts
    along lanes inside the kernel):
      [0      , 9R )  conv1 weights (BN1 scale folded, block-diag over packed images)
      [9R     , 18R)  conv2 weights (BN2 scale folded, block-diag over packed images)
      [18R    , +25)  depthwise conv1 weights (per-row / per-channel)
      [18R+25 , +25)  depthwise conv2 weights
      [18R+50 , +4 )  bn1 bias, bn2 bias, dw1 bias, dw2 bias
    """
    R = ipb * C
    eye = jnp.eye(ipb, dtype=jnp.float32)

    def conv_cols(w_hwio, bn_scale):
        # (3,3,Cin,Cout) -> (R, 9*R); column t*R + r_in maps packed input row r_in to
        # every packed output row (zero across image blocks).
        w = w_hwio.reshape(9, C, C) * bn_scale[None, None, :]     # (t, ci, co), BN folded
        wt = jnp.transpose(w, (0, 2, 1))                          # (t, co, ci)
        blk = jnp.einsum('oi,tcd->tocid', eye, wt).reshape(9, R, R)   # (t, r_out, r_in)
        return jnp.transpose(blk, (1, 0, 2)).reshape(R, 9 * R)

    def dw_cols(w_55c):
        # (5,5,C) -> (R, 25); column t holds the per-row (per-channel) depthwise weight.
        return jnp.tile(w_55c.reshape(25, C).T, (ipb, 1))

    def ch_col(v):
        return jnp.tile(v.reshape(C, 1), (ipb, 1))

    return jnp.concatenate(
        [conv_cols(p["w1"], p["bn1_scale"]),
         conv_cols(p["w2"], p["bn2_scale"]),
         dw_cols(p["dw1_w"]), dw_cols(p["dw2_w"]),
         ch_col(p["bn1_bias"]), ch_col(p["bn2_bias"]),
         ch_col(p["dw1_b"]), ch_col(p["dw2_b"])], axis=1)


# ----------------------------- fused Pallas kernel ---------------------------

def _basic_block_kernel(x_ref, pdf_ref, cols_ref, o_ref, *, H, W, R):
    """Whole BasicBlock forward for one (packed) image block, entirely in VMEM/vregs.

    Layout: a block is a (R, H*W) slab (H*W on the 128-lane axis, R = images*C on
    sublanes).  Conv halos are lane rolls (XLU) + iota-derived boundary masks; BN is
    folded into the conv-weight columns (inference mode)."""
    HW = H * W
    OFF_W1 = 0
    OFF_W2 = 9 * R
    OFF_D1 = 18 * R
    OFF_D2 = 18 * R + 25
    OFF_B = 18 * R + 50            # +0 bn1_b, +1 bn2_b, +2 dw1_b, +3 dw2_b

    x = x_ref[0]                   # (R, HW) f32
    cols = cols_ref[...]           # (R, 18R+54) -- the whole parameter set, ~1 vreg tile
    pdf = pdf_ref[...]             # (1, HW)

    # --- boundary masks generated in-kernel from iota (no mask operand / HBM traffic) ---
    lane = lax.broadcasted_iota(jnp.int32, (1, HW), 1)
    if (W & (W - 1)) == 0:
        col = jnp.bitwise_and(lane, W - 1)                       # col = lane % W (W pow2)
    else:  # generic W fallback (not exercised below): exact float floor-divide
        lane_f = lane.astype(jnp.float32)
        col = (lane_f - jnp.floor((lane_f + 0.5) * (1.0 / W)) * W).astype(jnp.int32)

    row_ok, col_ok = {}, {}
    for d in (-2, -1, 1, 2):
        # valid(h, w) for tap offset d on that axis: 0 <= h+d < H  (row mask needs no
        # division: row >= -d  <=>  lane >= -d*W,  row < H-d  <=>  lane < (H-d)*W).
        rcond = (lane >= (-d) * W) if d < 0 else (lane < (H - d) * W)
        ccond = (col >= -d) if d < 0 else (col < (W - d))
        row_ok[d] = jnp.where(rcond, 1.0, 0.0)
        col_ok[d] = jnp.where(ccond, 1.0, 0.0)

    def shifted(a, dy, dx):
        # a[(h+dy)*W + (w+dx)] with zeros outside the image (zero padding).
        if dy == 0 and dx == 0:
            return a
        d = dy * W + dx
        shift = (-d) % HW if _ROLL_IS_JNP else d % HW
        r = pltpu.roll(a, shift=shift, axis=1)                   # XLU lane rotate
        if dy != 0 and dx != 0:
            return r * (row_ok[dy] * col_ok[dx])
        return r * (row_ok[dy] if dy != 0 else col_ok[dx])

    def wcol(j):
        # one parameter column, (R, 1); lane-broadcasts against (*, HW) slabs.
        return cols[:, j:j + 1]

    def conv3x3(a, off_w, bias_idx, relu):
        # Channel mixing as (R,1) x (1,HW) outer-product FMAs on the VPU (C=4 -> MXU
        # would be <1% utilized; see TODO at top re. benchmarking the MXU variant).
        acc = jnp.zeros((R, HW), jnp.float32)
        t = 0
        for dy in (-1, 0, 1):
            for dx in (-1, 0, 1):
                sh = shifted(a, dy, dx)                          # (R, HW)
                for r_in in range(R):
                    acc = acc + wcol(off_w + t * R + r_in) * sh[r_in:r_in + 1, :]
                t += 1
        out = acc + wcol(OFF_B + bias_idx)                       # folded BatchNorm bias
        return jnp.maximum(out, 0.0) if relu else out

    def dwconv5x5(a, off_w, bias_idx, relu):
        acc = jnp.zeros((R, HW), jnp.float32)
        t = 0
        for dy in (-2, -1, 0, 1, 2):
            for dx in (-2, -1, 0, 1, 2):
                acc = acc + shifted(a, dy, dx) * wcol(off_w + t)
                t += 1
        out = acc + wcol(OFF_B + bias_idx)
        return jnp.maximum(out, 0.0) if relu else out

    y1 = conv3x3(x, OFF_W1, 0, relu=True)        # conv1 + bn1 (folded) + relu
    y2 = conv3x3(y1, OFF_W2, 1, relu=False)      # conv2 + bn2 (folded)
    tm = dwconv5x5(y2, OFF_D1, 2, relu=True)     # value_embed conv + relu
    v = dwconv5x5(tm, OFF_D2, 3, relu=False)     # value_embed conv
    o_ref[0] = jnp.maximum(y2 + v * pdf + x, 0.0)  # DisLayer + residual + relu


# ----------------------------- wrapper ---------------------------------------

@jax.jit
def basic_block_forward(x_nchw, p):
    """BasicBlock forward, NCHW in / NCHW out, one fused pallas_call."""
    N, C, H, W = x_nchw.shape
    HW = H * W

    # Pack images into the 8-sublane axis when it keeps a >=2-length parallel grid
    # (review items 3+4): N==2 -> 1 img/step (both v7x cores busy); N>=4 even -> 8-row
    # slabs (full vregs, unmasked stores, half the per-step pipeline overhead).
    ipb = max(1, 8 // C)
    if N % ipb != 0 or N // ipb < 2:
        ipb = 1
    R = ipb * C
    nb = N // ipb

    # Tiny, batch-independent prep (fused by XLA).  All reshapes are free (no transposes).
    x = x_nchw.astype(jnp.float32).reshape(nb, R, HW)
    pdf = _pdf_mean_map(H, W, p["loc"], p["scal"], p["ps"]).reshape(1, HW)
    cols = _build_cols(p, C, ipb)                               # (R, 18R+54), one VMEM tile

    out = pl.pallas_call(
        functools.partial(_basic_block_kernel, H=H, W=W, R=R),
        out_shape=jax.ShapeDtypeStruct((nb, R, HW), jnp.float32),
        grid=(nb,),
        in_specs=[
            pl.BlockSpec((1, R, HW), lambda i: (i, 0, 0)),      # packed activations
            pl.BlockSpec((1, HW), lambda i: (0, 0)),            # MVN pdf mean map
            pl.BlockSpec(cols.shape, lambda i: (0, 0)),         # all parameters, lane-dense
        ],
        out_specs=pl.BlockSpec((1, R, HW), lambda i: (i, 0, 0)),
        compiler_params=pltpu.CompilerParams(
            dimension_semantics=("parallel",)),                 # image block per TC on v7x
    )(x, pdf, cols)

    return out.reshape(N, C, H, W)


# ----------------------------- parameters ------------------------------------

def init_params(key, planes, local_num=8):
    # TODO(synk): BatchNorm is folded in inference mode (running stats), not the
    # training-mode batch statistics of a freshly constructed torch module.
    C = planes
    eps = 1e-5
    ks = jax.random.split(key, 16)

    def bn(kg, kb, km, kv):
        gamma = jax.random.uniform(kg, (C,), jnp.float32, 0.5, 1.5)
        beta = 0.1 * jax.random.normal(kb, (C,), jnp.float32)
        mean = 0.1 * jax.random.normal(km, (C,), jnp.float32)
        var = jax.random.uniform(kv, (C,), jnp.float32, 0.5, 1.5)
        scale = gamma / jnp.sqrt(var + eps)
        return scale, beta - mean * scale

    bn1_scale, bn1_bias = bn(ks[2], ks[3], ks[4], ks[5])
    bn2_scale, bn2_bias = bn(ks[6], ks[7], ks[8], ks[9])

    return dict(
        w1=0.1 * jax.random.normal(ks[0], (3, 3, C, C), jnp.float32),   # HWIO
        w2=0.1 * jax.random.normal(ks[1], (3, 3, C, C), jnp.float32),
        bn1_scale=bn1_scale, bn1_bias=bn1_bias,
        bn2_scale=bn2_scale, bn2_bias=bn2_bias,
        dw1_w=0.1 * jax.random.normal(ks[12], (5, 5, C), jnp.float32),
        dw1_b=0.1 * jax.random.normal(ks[13], (C,), jnp.float32),
        dw2_w=0.1 * jax.random.normal(ks[14], (5, 5, C), jnp.float32),
        dw2_b=0.1 * jax.random.normal(ks[15], (C,), jnp.float32),
        loc=jax.random.uniform(ks[10], (local_num, 2), jnp.float32),              # ~ torch.rand
        scal=jax.random.uniform(ks[11], (local_num, 2), jnp.float32, 0.05, 1.0),  # bounded from 0
        ps=jnp.ones((1,), jnp.float32),                                           # position_scal
    )


# ----------------------------- pure-JAX reference ----------------------------

def reference_forward(x_nchw, p):
    x = jnp.transpose(x_nchw, (0, 2, 3, 1)).astype(jnp.float32)      # NCHW -> NHWC
    dn = ("NHWC", "HWIO", "NHWC")
    hi = lax.Precision.HIGHEST
    C = x.shape[-1]

    def conv3(z, w):
        return lax.conv_general_dilated(z, w, (1, 1), ((1, 1), (1, 1)),
                                        dimension_numbers=dn, precision=hi)

    def dw5(z, w, b):
        return lax.conv_general_dilated(z, w.reshape(5, 5, 1, C), (1, 1),
                                        ((2, 2), (2, 2)), dimension_numbers=dn,
                                        feature_group_count=C, precision=hi) + b

    y1 = jnp.maximum(conv3(x, p["w1"]) * p["bn1_scale"] + p["bn1_bias"], 0.0)
    y2 = conv3(y1, p["w2"]) * p["bn2_scale"] + p["bn2_bias"]
    t = jnp.maximum(dw5(y2, p["dw1_w"], p["dw1_b"]), 0.0)
    v = dw5(t, p["dw2_w"], p["dw2_b"])

    H, W = x.shape[1:3]
    pdf_mean = _pdf_mean_map(H, W, p["loc"], p["scal"], p["ps"])      # (H, W)
    out = jnp.maximum(y2 + v * pdf_mean[None, :, :, None] + x, 0.0)
    return jnp.transpose(out, (0, 3, 1, 2))


# ----------------------------- main -------------------------------------------

if __name__ == "__main__":
    key = jax.random.PRNGKey(0)
    kx, kx2, kp = jax.random.split(key, 3)

    C, H, W = 4, 16, 16                      # inplanes=planes, stride=1, downsample=None
    params = init_params(kp, planes=C, local_num=8)

    def check(x):
        out = jax.block_until_ready(basic_block_forward(x, params))
        ref = jax.block_until_ready(reference_forward(x, params))
        max_err = float(jnp.max(jnp.abs(out - ref)))
        tol = 1e-4 * (1.0 + float(jnp.max(jnp.abs(ref))))
        ok = (out.shape == x.shape
              and bool(jnp.all(jnp.isfinite(out)))
              and max_err < tol)
        if not ok:
            raise AssertionError(
                f"Pallas output mismatch: shape={out.shape} max_abs_err={max_err} tol={tol}")

    # Spec-sized case (batch=2): 1 image / grid step, grid=(2,) "parallel".
    check(jax.random.normal(kx, (2, C, H, W), jnp.float32))
    # Sublane-packed case (batch=4): 2 images / 8-sublane block, grid=(2,) "parallel".
    check(jax.random.normal(kx2, (4, C, H, W), jnp.float32))

    print("KERNEL_OK")
</pallas_src>

<mosaic_0001>
module attributes {stable_mosaic.version = 11 : i64} {
  func.func @probe(%arg0: memref<1x128xf32, #tpu.memory_space<vmem>>, %arg1: memref<1x128xf32, #tpu.memory_space<vmem>>) attributes {dimension_semantics = [], scalar_prefetch = 0 : i64, scratch_operands = 0 : i64, tpu.core_type = #tpu.core_type<tc>} {
    %c0 = arith.constant 0 : index
    %c0_0 = arith.constant 0 : index
    %0 = vector.load %arg0[%c0, %c0_0] : memref<1x128xf32, #tpu.memory_space<vmem>>, vector<1x128xf32>
    %c1_i32 = arith.constant 1 : i32
    %1 = tpu.dynamic_rotate %0 by %c1_i32 dim 1 : vector<1x128xf32>, i32 -> vector<1x128xf32>
    %c0_1 = arith.constant 0 : index
    %c0_2 = arith.constant 0 : index
    %2 = vector.load %arg1[%c0_1, %c0_2] : memref<1x128xf32, #tpu.memory_space<vmem>>, vector<1x128xf32>
    tpu.vector_store %arg1[%c0_1, %c0_2], %1 {strides = array<i32>} : memref<1x128xf32, #tpu.memory_space<vmem>>, vector<1x128xf32>,
    return
  }
}

</mosaic_0001>

<bundles_post_ra>
// kernel: tpu_custom_call.1
= control target key start
LH: loop header
LB: loop body
LE: loop exit
PB: predicated region body
PF: predicated region fallthrough
CT: control target
= control target key end

     0   :  { %6 = vsyncpa [#allocation3], 0  ;;  %s128_s0 = inlined_call_operand.hbm [shape: f32[1,128], index: 0, kind: input, shape index: {}]   ;;  %s129_s1 = inlined_call_operand.hbm [shape: f32[1,128], index: 1, kind: output, shape index: {}]  }
   0x1   :  { %7 = vsyncpa [#allocation4], 0  ;;  %s91_s6 = smov [#allocation2]   ;;  %s43_s10 = scalar_lea.hbm %s128_s0, 16 }
   0x2   :  { %s14_s7 = sshll.u32 %s91_s6, 4  ;;  %p44_p0 = scmp.ne.s32.totalorder %s128_s0, %s43_s10  ;;  %s15_s7 = int_to_ptr.vmem [resolvable:$true] %s14_s7 }
   0x3   :  { %p47_p1 = scmp.lt.u32.totalorder %s43_s10, %s128_s0 }
   0x5   :  { %p49_p2 = pnand %p47_p1, %p44_p0 }
   0x7   :  { %52 = shalt.err (!%p49_p2)
}
   0x8   :  { %s53_s15 = scalar_lea.vmem %s15_s7, 16  ;;  %s57_s16 = scalar_lea.vmem %s15_s7, 32 }
   0x9   :  { %p54_p3 = scmp.ne.s32.totalorder %s15_s7, %s53_s15  ;;  %p58_p4 = scmp.lt.s32.totalorder %s15_s7, %s15_s7 }
   0xa   :  { %p59_p5 = scmp.lt.s32.totalorder %s57_s16, %s53_s15 }
   0xc   :  { %p60_p6 = por %p59_p5, %p58_p4 }
   0xe   :  { %p61_p7 = pnand %p60_p6, %p54_p3 }
  0x10   :  { %64 = shalt.err (!%p61_p7)
}
  0x11   :  { %17 = dma.hbm_to_vmem [thread:$0]  %s128_s0, 16, %s15_s7, [#allocation3]  }
  0x12   :  { %87 = dma.done.wait [#allocation3], 16  }
  0x13   :  { %88 = vsyncadd [#allocation3], 4294967280  ;;  %v21_v0 = vld [vmem:[#allocation2] sm:$0x1]  ;;  %s92_s19 = smov 1   ;;  %s93_s20 = smov [#allocation5]  }
  0x14   :  { %22 = vrot.lane.b32.xlu0 %v21_v0, %s92_s19  ;;  %s31_s21 = sshll.u32 %s93_s20, 4  ;;  %s32_s21 = int_to_ptr.vmem [resolvable:$true] %s31_s21 }
  0x15   :  { %s65_s22 = scalar_lea.vmem %s32_s21, 16  ;;  %s69_s23 = scalar_lea.vmem %s32_s21, 32 }
  0x16   :  { %p66_p8 = scmp.ne.s32.totalorder %s32_s21, %s65_s22  ;;  %p70_p9 = scmp.lt.s32.totalorder %s32_s21, %s32_s21 }
  0x17   :  { %p71_p10 = scmp.lt.s32.totalorder %s69_s23, %s65_s22 }
  0x19   :  { %p72_p11 = por %p71_p10, %p70_p9 }
  0x1b   :  { %p73_p12 = pnand %p72_p11, %p66_p8 }
  0x86   :  { %v23_v1 = vpop.permute.xlu0 %22 }
  0x87   :  { %24 = vst [vmem:[#allocation5] sm:$0x1] %v23_v1 }
  0x88   :  { %76 = shalt.err (!%p73_p12)
}
  0x89   :  { %s77_s25 = scalar_lea.hbm %s129_s1, 16 }
  0x8a   :  { %p78_p13 = scmp.ne.s32.totalorder %s129_s1, %s77_s25  ;;  %p81_p0 = scmp.lt.u32.totalorder %s77_s25, %s129_s1 }
  0x8c   :  { %p83_p1 = pnand %p81_p0, %p78_p13 }
  0x8e   :  { %86 = shalt.err (!%p83_p1)
}
  0x8f   :  { %34 = dma.vmem_to_hbm [thread:$0]  %s32_s21, 16, %s129_s1, [#allocation4]  }
  0x90   :  { %89 = dma.done.wait [#allocation4], 16  }
  0x91   :  { %90 = vsyncadd [#allocation4], 4294967280 }
  0x92   :  { %38 = vsyncpa [#allocation3], 1 }
  0x93   :  { %39 = vsyncpa [#allocation4], 1 }

</bundles_post_ra>
